<compile_context>
chip_gen: v5e
topology: v5e:2x2
jax: 0.10.0
libtpu: 0.0.40
codegen_flags: <defaults>
</compile_context>

<pallas_src>
import jax
import jax.numpy as jnp
from jax.experimental import pallas as pl
from jax.experimental.pallas import tpu as pltpu


def gcn_kernel(x_ref, w_ref, bd_ref, bias_ref, o_ref):
    """Fused ST-GCN graph conv, fully lane-dense (lane index = t*V_pad + v).

    x_ref   : (C_in, T_tile*V_pad)   bf16   input block
    w_ref   : (K*C_out, C_in)        bf16   1x1-conv weight, rows k-major (k*C_out + c)
    bd_ref  : (K, GROUP, GROUP)      f32    I_G (kron) Bsum_pad[k], GROUP = G*V_pad (=128 for V<=128)
    bias_ref: (C_out, GROUP)         f32    conv bias folded through the graph contraction
    o_ref   : (C_out, T_tile*V_pad)         output block (unmasked 128-multiple stores)
    """
    k_sz, group, _ = bd_ref.shape
    c_out = bias_ref.shape[0]
    n_groups = x_ref.shape[-1] // group

    @pl.loop(0, n_groups)                                     # rolled: bounds live ranges
    def _(g):
        start = pl.multiple_of(g * group, group)
        xg = x_ref[:, pl.ds(start, group)]                    # (C_in, GROUP) bf16
        acc = bias_ref[...]                                   # (C_out, GROUP) f32 (bias fold)
        for k in range(k_sz):                                 # K is tiny & static
            # 1x1 conv for kernel k (bias already folded out): bf16 MXU, f32 accumulate.
            yk = jnp.dot(w_ref[k * c_out:(k + 1) * c_out, :], xg,
                         preferred_element_type=jnp.float32)  # (C_out, GROUP) f32
            # Graph contraction as a block-diagonal matmul; result stays lane-dense.
            acc = acc + jnp.dot(yk, bd_ref[k],
                                preferred_element_type=jnp.float32)
        o_ref[:, pl.ds(start, group)] = acc.astype(o_ref.dtype)


def _vmem_capacity_bytes():
    try:
        return int(pltpu.get_tpu_info().vmem_capacity_bytes)
    except Exception:
        return 64 * 1024 * 1024          # conservative default (v7x-sized VMEM)


def _choose_t_tile(T, V_pad, G, C_in, C_out, K, out_bytes, budget_bytes, want_multi):
    """Largest T_tile (a multiple of G, so the lane count is a multiple of the 128-lane
    group) whose double-buffered blocks + resident operands fit the VMEM budget.
    Optionally forces >=2 T tiles so the grid has >=2 'parallel' steps (v7x: 2 TCs)."""
    group = G * V_pad
    resident = 2 * (K * C_out * C_in * 2        # W  (bf16, double-buffered)
                    + K * group * group * 4     # block-diag Bsum (f32)
                    + C_out * group * 4)        # folded-bias tile (f32)
    live = 2 * C_out * group * 4 + C_in * group * 2   # in-kernel acc / yk / xg values
    m_max = pl.cdiv(T, G)
    for m in range(m_max, 0, -1):
        lanes = m * group
        blocks = 2 * (C_in * lanes * 2 + C_out * lanes * out_bytes)  # double-buffered in/out
        if resident + live + blocks > budget_bytes:
            continue
        if want_multi and m_max >= 2 and pl.cdiv(T, m * G) < 2:
            continue                            # keep >=2 grid steps for the 2nd TensorCore
        return m * G
    return G                                    # minimum legal tile (one 128-lane group)


def conv_temporal_graphical(x, A, importance, importance2, importance3,
                            weight, bias, kernel_size, out_dtype=None):
    """Pallas implementation of ConvTemporalGraphical.forward (t_kernel_size=1).

    x: (N, C_in, T, V) f32; A/importance*: (K, V, V) f32
    weight: (K*C_out, C_in) f32 (1x1-conv weight squeezed); bias: (K*C_out,) f32
    Returns (out, A) with out: (N, C_out, T, V).
    """
    N, C_in, T, V = x.shape
    K = kernel_size
    C_out = weight.shape[0] // K
    # On v5e pass out_dtype=jnp.bfloat16 if downstream tolerates it (halves writeback).
    out_dtype = x.dtype if out_dtype is None else out_dtype

    # ---- tiny XLA glue (O(K*V^2) / O(K*C)): combined adjacency & folded bias ----
    Bsum = (A * importance
            + (A ** 2) * importance2
            + (A ** 3) * importance3)                           # (K, V, V) f32

    # Lane padding: V -> V_pad (power of two dividing 128; or multiple of 128 if V>128).
    if V <= 128:
        V_pad = pl.next_power_of_2(V)
        G = 128 // V_pad
    else:
        V_pad = pl.cdiv(V, 128) * 128
        G = 1
    GROUP = G * V_pad                                           # 128 whenever V <= 128

    Bsum_pad = jnp.zeros((K, V_pad, V_pad), jnp.float32).at[:, :V, :V].set(Bsum)
    eye = jnp.eye(G, dtype=jnp.float32)
    # Block-diagonal graph operator per k: BD[k] = I_G (kron) Bsum_pad[k].  Kept f32
    # (A^3 terms); switch to bf16 for max MXU rate if accuracy allows.
    bd = jnp.einsum('gh,kvw->kgvhw', eye, Bsum_pad).reshape(K, GROUP, GROUP)

    # Conv bias folded through the graph contraction:
    #   bias_eff[c, w] = sum_k b[k, c] * sum_v Bsum[k, v, w]   (padded w lanes stay 0)
    col_sum = jnp.sum(Bsum_pad, axis=1)                         # (K, V_pad)
    bias_eff = jnp.einsum('kc,kw->cw', bias.reshape(K, C_out), col_sum)
    bias_tile = jnp.tile(bias_eff, (1, G)).astype(jnp.float32)  # (C_out, GROUP)

    # ---- generation-aware tiling (64 MiB VMEM on v7x vs 128 MiB on v5e/v6e) ----
    cap = _vmem_capacity_bytes()
    budget = cap // 4                                           # ~16 MiB v7x / ~32 MiB v5e,v6e
    vmem_limit = int(min(cap * 3 // 4, cap - (8 << 20)))        # ~48 MiB v7x / ~96 MiB v5e,v6e

    out_bytes = jnp.dtype(out_dtype).itemsize
    T_tile = _choose_t_tile(T, V_pad, G, C_in, C_out, K, out_bytes, budget,
                            want_multi=(N < 2))
    n_t = pl.cdiv(T, T_tile)
    T_padded = n_t * T_tile
    lanes_tile = T_tile * V_pad

    # ---- layout plumbing: zero-pad (T, V), flatten to a lane-dense slab, bf16 operands ----
    x_p = x
    if T_padded != T or V_pad != V:
        x_p = jnp.pad(x, ((0, 0), (0, 0), (0, T_padded - T), (0, V_pad - V)))
    x_r = x_p.reshape(N, C_in, T_padded * V_pad).astype(jnp.bfloat16)
    w_b = weight.astype(jnp.bfloat16)                           # (K*C_out, C_in), rows k-major

    out_flat = pl.pallas_call(
        gcn_kernel,
        out_shape=jax.ShapeDtypeStruct((N, C_out, T_padded * V_pad), out_dtype),
        grid_spec=pltpu.PrefetchScalarGridSpec(
            num_scalar_prefetch=0,
            grid=(N, n_t),
            in_specs=[
                pl.BlockSpec((None, C_in, lanes_tile), lambda n, t: (n, 0, t)),
                pl.BlockSpec((K * C_out, C_in), lambda n, t: (0, 0)),
                pl.BlockSpec((K, GROUP, GROUP), lambda n, t: (0, 0, 0)),
                pl.BlockSpec((C_out, GROUP), lambda n, t: (0, 0)),
            ],
            out_specs=pl.BlockSpec((None, C_out, lanes_tile), lambda n, t: (n, 0, t)),
        ),
        compiler_params=pltpu.CompilerParams(
            dimension_semantics=("parallel", "parallel"),
            vmem_limit_bytes=vmem_limit),
    )(x_r, w_b, bd, bias_tile)

    out = out_flat.reshape(N, C_out, T_padded, V_pad)[:, :, :T, :V]
    return out, A


def reference_forward(x, A, imp, imp2, imp3, weight, bias, K):
    """Pure-JAX f32 replica of the PyTorch forward, for verification."""
    y = jnp.einsum('oc,nctv->notv', weight, x) + bias[None, :, None, None]
    n, kc, t, v = y.shape
    y = y.reshape(n, K, kc // K, t, v)
    x1 = jnp.einsum('nkctv,kvw->nctw', y, A * imp)
    x2 = jnp.einsum('nkctv,kvw->nctw', y, (A ** 2) * imp2)
    x3 = jnp.einsum('nkctv,kvw->nctw', y, (A ** 3) * imp3)
    return x1 + x2 + x3


if __name__ == "__main__":
    # Small shapes consistent with the module.
    N, C_in, C_out, T, V, K = 2, 4, 8, 8, 16, 3

    key = jax.random.PRNGKey(0)
    kx, ka, ki1, ki2, ki3, kw, kb = jax.random.split(key, 7)

    x = jax.random.normal(kx, (N, C_in, T, V), dtype=jnp.float32)
    A = jax.random.uniform(ka, (K, V, V), dtype=jnp.float32)
    importance = jax.random.uniform(ki1, (K, V, V), dtype=jnp.float32)
    importance2 = jax.random.uniform(ki2, (K, V, V), dtype=jnp.float32)
    importance3 = jax.random.uniform(ki3, (K, V, V), dtype=jnp.float32)

    # Conv2d weight (K*C_out, C_in, 1, 1) squeezed, bias (K*C_out,).
    weight = jax.random.normal(kw, (K * C_out, C_in), dtype=jnp.float32) * 0.1
    bias = jax.random.normal(kb, (K * C_out,), dtype=jnp.float32) * 0.1
    # TODO(synk): general t_kernel_size/t_stride/t_padding/t_dilation temporal conv not
    # implemented; module defaults (1,1,0,1) make the conv a pure 1x1 channel matmul.

    out, A_out = conv_temporal_graphical(
        x, A, importance, importance2, importance3, weight, bias, K)
    out = jax.block_until_ready(out)

    ref = reference_forward(x, A, importance, importance2, importance3, weight, bias, K)
    ref = jax.block_until_ready(ref)

    assert out.shape == (N, C_out, T, V)
    assert A_out.shape == (K, V, V)
    # bf16 MXU operands for the channel matmul (f32 accumulation, f32 graph RHS):
    # allow bf16-level noise vs the exact f32 reference.
    err = jnp.max(jnp.abs(out - ref))
    assert jnp.allclose(out, ref, rtol=5e-2, atol=5e-2), f"max abs err {err}"

    print("KERNEL_OK")
</pallas_src>

<mosaic_0001>
module attributes {stable_mosaic.version = 11 : i64} {
  func.func @gcn_kernel(%arg0: i32, %arg1: i32, %arg2: memref<1x4x128xbf16, #tpu.memory_space<vmem>>, %arg3: memref<24x4xbf16, #tpu.memory_space<vmem>>, %arg4: memref<3x128x128xf32, #tpu.memory_space<vmem>>, %arg5: memref<8x128xf32, #tpu.memory_space<vmem>>, %arg6: memref<1x8x128xf32, #tpu.memory_space<vmem>>) attributes {dimension_semantics = [#tpu.dimension_semantics<parallel>, #tpu.dimension_semantics<parallel>], iteration_bounds = array<i64: 2, 1>, scalar_prefetch = 0 : i64, scratch_operands = 0 : i64, tpu.core_type = #tpu.core_type<tc>, window_params = [{transform_indices = @transform_0, window_bounds = array<i64: 1, 4, 128>}, {pipeline_mode = #tpu.pipeline_mode<synchronous>, transform_indices = @transform_1, window_bounds = array<i64: 24, 4>}, {pipeline_mode = #tpu.pipeline_mode<synchronous>, transform_indices = @transform_2, window_bounds = array<i64: 3, 128, 128>}, {pipeline_mode = #tpu.pipeline_mode<synchronous>, transform_indices = @transform_3, window_bounds = array<i64: 8, 128>}, {transform_indices = @transform_4, window_bounds = array<i64: 1, 8, 128>}]} {
    %c0_i32 = arith.constant 0 : i32
    %c1_i32 = arith.constant 1 : i32
    %0 = arith.muli %c0_i32, %c1_i32 : i32
    %c0_i32_0 = arith.constant 0 : i32
    %1 = arith.addi %c0_i32_0, %0 : i32
    %c128_i32 = arith.constant 128 : i32
    %2 = arith.muli %1, %c128_i32 : i32
    %3 = tpu.assume_multiple %2, 128 : i32
    %c0 = arith.constant 0 : index
    %c0_1 = arith.constant 0 : index
    %4 = arith.index_cast %3 : i32 to index
    %5 = vector.load %arg2[%c0, %c0_1, %4] : memref<1x4x128xbf16, #tpu.memory_space<vmem>>, vector<1x4x128xbf16>
    %6 = vector.shape_cast %5 : vector<1x4x128xbf16> to vector<4x128xbf16>
    %c0_2 = arith.constant 0 : index
    %c0_3 = arith.constant 0 : index
    %7 = vector.load %arg5[%c0_2, %c0_3] : memref<8x128xf32, #tpu.memory_space<vmem>>, vector<8x128xf32>
    %c0_4 = arith.constant 0 : index
    %c0_5 = arith.constant 0 : index
    %8 = vector.load %arg3[%c0_4, %c0_5] : memref<24x4xbf16, #tpu.memory_space<vmem>>, vector<8x4xbf16>
    %cst = arith.constant dense<0.000000e+00> : vector<8x128xf32>
    %9 = tpu.matmul %8, %6, %cst {dimension_numbers = #tpu.dot_dimension_numbers<[1], [0], [0], [1], [0, 0, 1, 1], [], []>} : vector<8x4xbf16>, vector<4x128xbf16>, vector<8x128xf32> -> vector<8x128xf32>
    %c0_6 = arith.constant 0 : index
    %c0_7 = arith.constant 0 : index
    %c0_8 = arith.constant 0 : index
    %10 = vector.load %arg4[%c0_6, %c0_7, %c0_8] : memref<3x128x128xf32, #tpu.memory_space<vmem>>, vector<1x128x128xf32>
    %11 = vector.shape_cast %10 : vector<1x128x128xf32> to vector<128x128xf32>
    %cst_9 = arith.constant dense<0.000000e+00> : vector<8x128xf32>
    %12 = tpu.matmul %9, %11, %cst_9 {dimension_numbers = #tpu.dot_dimension_numbers<[1], [0], [0], [1], [0, 0, 1, 1], [], []>} : vector<8x128xf32>, vector<128x128xf32>, vector<8x128xf32> -> vector<8x128xf32>
    %13 = arith.addf %7, %12 : vector<8x128xf32>
    %c8 = arith.constant 8 : index
    %c0_10 = arith.constant 0 : index
    %14 = vector.load %arg3[%c8, %c0_10] : memref<24x4xbf16, #tpu.memory_space<vmem>>, vector<8x4xbf16>
    %cst_11 = arith.constant dense<0.000000e+00> : vector<8x128xf32>
    %15 = tpu.matmul %14, %6, %cst_11 {dimension_numbers = #tpu.dot_dimension_numbers<[1], [0], [0], [1], [0, 0, 1, 1], [], []>} : vector<8x4xbf16>, vector<4x128xbf16>, vector<8x128xf32> -> vector<8x128xf32>
    %c1 = arith.constant 1 : index
    %c0_12 = arith.constant 0 : index
    %c0_13 = arith.constant 0 : index
    %16 = vector.load %arg4[%c1, %c0_12, %c0_13] : memref<3x128x128xf32, #tpu.memory_space<vmem>>, vector<1x128x128xf32>
    %17 = vector.shape_cast %16 : vector<1x128x128xf32> to vector<128x128xf32>
    %cst_14 = arith.constant dense<0.000000e+00> : vector<8x128xf32>
    %18 = tpu.matmul %15, %17, %cst_14 {dimension_numbers = #tpu.dot_dimension_numbers<[1], [0], [0], [1], [0, 0, 1, 1], [], []>} : vector<8x128xf32>, vector<128x128xf32>, vector<8x128xf32> -> vector<8x128xf32>
    %19 = arith.addf %13, %18 : vector<8x128xf32>
    %c16 = arith.constant 16 : index
    %c0_15 = arith.constant 0 : index
    %20 = vector.load %arg3[%c16, %c0_15] : memref<24x4xbf16, #tpu.memory_space<vmem>>, vector<8x4xbf16>
    %cst_16 = arith.constant dense<0.000000e+00> : vector<8x128xf32>
    %21 = tpu.matmul %20, %6, %cst_16 {dimension_numbers = #tpu.dot_dimension_numbers<[1], [0], [0], [1], [0, 0, 1, 1], [], []>} : vector<8x4xbf16>, vector<4x128xbf16>, vector<8x128xf32> -> vector<8x128xf32>
    %c2 = arith.constant 2 : index
    %c0_17 = arith.constant 0 : index
    %c0_18 = arith.constant 0 : index
    %22 = vector.load %arg4[%c2, %c0_17, %c0_18] : memref<3x128x128xf32, #tpu.memory_space<vmem>>, vector<1x128x128xf32>
    %23 = vector.shape_cast %22 : vector<1x128x128xf32> to vector<128x128xf32>
    %cst_19 = arith.constant dense<0.000000e+00> : vector<8x128xf32>
    %24 = tpu.matmul %21, %23, %cst_19 {dimension_numbers = #tpu.dot_dimension_numbers<[1], [0], [0], [1], [0, 0, 1, 1], [], []>} : vector<8x128xf32>, vector<128x128xf32>, vector<8x128xf32> -> vector<8x128xf32>
    %25 = arith.addf %19, %24 : vector<8x128xf32>
    %c0_20 = arith.constant 0 : index
    %c0_21 = arith.constant 0 : index
    %26 = arith.index_cast %3 : i32 to index
    %27 = vector.load %arg6[%c0_20, %c0_21, %26] : memref<1x8x128xf32, #tpu.memory_space<vmem>>, vector<1x8x128xf32>
    %28 = vector.shape_cast %27 : vector<1x8x128xf32> to vector<8x128xf32>
    %29 = vector.shape_cast %25 : vector<8x128xf32> to vector<1x8x128xf32>
    tpu.vector_store %arg6[%c0_20, %c0_21, %26], %29 {strides = array<i32>} : memref<1x8x128xf32, #tpu.memory_space<vmem>>, vector<1x8x128xf32>,
    %c1_i32_22 = arith.constant 1 : i32
    return
  }
  func.func @transform_0(%arg0: i32, %arg1: i32) -> (i32, i32, i32) {
    %c0_i32 = arith.constant 0 : i32
    %c0_i32_0 = arith.constant 0 : i32
    return %arg0, %c0_i32, %arg1 : i32, i32, i32
  }
  func.func @transform_1(%arg0: i32, %arg1: i32) -> (i32, i32) {
    %c0_i32 = arith.constant 0 : i32
    %c0_i32_0 = arith.constant 0 : i32
    %c0_i32_1 = arith.constant 0 : i32
    return %c0_i32, %c0_i32_0 : i32, i32
  }
  func.func @transform_2(%arg0: i32, %arg1: i32) -> (i32, i32, i32) {
    %c0_i32 = arith.constant 0 : i32
    %c0_i32_0 = arith.constant 0 : i32
    %c0_i32_1 = arith.constant 0 : i32
    %c0_i32_2 = arith.constant 0 : i32
    return %c0_i32, %c0_i32_0, %c0_i32_1 : i32, i32, i32
  }
  func.func @transform_3(%arg0: i32, %arg1: i32) -> (i32, i32) {
    %c0_i32 = arith.constant 0 : i32
    %c0_i32_0 = arith.constant 0 : i32
    %c0_i32_1 = arith.constant 0 : i32
    return %c0_i32, %c0_i32_0 : i32, i32
  }
  func.func @transform_4(%arg0: i32, %arg1: i32) -> (i32, i32, i32) {
    %c0_i32 = arith.constant 0 : i32
    %c0_i32_0 = arith.constant 0 : i32
    return %arg0, %c0_i32, %arg1 : i32, i32, i32
  }
}

</mosaic_0001>

<bundles_post_ra>
// kernel: tpu_custom_call.1
= control target key start
LH: loop header
LB: loop body
LE: loop exit
PB: predicated region body
PF: predicated region fallthrough
CT: control target
= control target key end

     0   :  { %9 = vsyncpa [#allocation3], 0  ;;  %s849_s0 = inlined_call_operand.vmem [shape: bf16[2,4,128], index: 0, kind: input, shape index: {}]   ;;  %s850_s1 = inlined_call_operand.vmem [shape: bf16[24,4], index: 1, kind: input, shape index: {}]   ;;  %s851_s2 = inlined_call_operand.hbm [shape: f32[3,128,128], index: 2, kind: input, shape index: {}]   ;;  %s852_s3 = inlined_call_operand.vmem [shape: f32[8,128], index: 3, kind: input, shape index: {}]   ;;  %s853_s4 = inlined_call_operand.hbm [shape: f32[2,8,128], index: 4, kind: output, shape index: {}]  }
   0x1   :  { %10 = vsyncpa [#allocation4], 0 }
   0x2   :  { %12 = vsyncpa [#allocation4 + $0x1], 0  ;;  %s734_s15 = smov 0   ;;  %s736_s16 = smov 0  }
   0x3   :  { %s738_s17 = smov 0   ;;  %s740_s18 = smov 0  }
   0x4   :  { %s742_s19 = smov 0   ;;  %s744_s20 = smov 0  }
   0x5 LB: > { %s508_s21 = sadd.s32 4294967295, %s704_s20   ;;  %s509_s22 = sadd.s32 4294967294, %s704_s20   ;;  %s704_s20 = sphi %s744_s20, %s18_s20   ;;  %s700_s19 = sphi %s742_s19, %s860_s19   ;;  %s696_s18 = sphi %s740_s18, %s859_s18   ;;  %s692_s17 = sphi %s738_s17, %s858_s17   ;;  %s688_s16 = sphi %s736_s16, %s857_s16   ;;  %s684_s15 = sphi %s734_s15, %s856_s15  }
   0x6   : > { %s30_s23 = sadd.s32 1, %s700_s19  ;;  %s130_s24 = sadd.s32 1, %s692_s17 }
   0x7   : > { %p32_p0 = scmp.ge.s32.totalorder %s30_s23, 2  ;;  %p140_p1 = scmp.ne.s32.totalorder %s692_s17, %s688_s16 }
   0x8   : > { %p141_p2 = scmp.eq.s32.totalorder %s508_s21, 1  ;;  %p146_p3 = scmp.ne.s32.totalorder %s688_s16, %s684_s15 }
   0x9   : > { %s862_s23 = smov (%p32_p0, %s30_s23), 0  ;;  %p147_p5 = scmp.eq.s32.totalorder %s509_s22, 1 }
   0xa   : > { %p774_p4 = por %p141_p2, %p140_p1  ;;  %s125_s26 = ssub.s32 %s700_s19, %s862_s23 }
   0xb   : > { %p510_p6 = scmp.ge.s32.totalorder %s704_s20, 1  ;;  %p128_p7 = scmp.eq.s32.totalorder %s125_s26, 0 }
   0xc   : > { %p781_p8 = por %p147_p5, %p146_p3  ;;  %p154_p9 = scmp.lt.s32.totalorder %s704_s20, 3 }
   0xd   : > { %s787_s28 = scalar_select %p128_p7, %s692_s17, %s130_s24  }
   0xe   : > { %p155_p10 = pnand %p510_p6, %p154_p9  ;;  %p538_p11 = scmp.eq.s32.totalorder %s508_s21, 0 }
   0xf   : > { %s168_s5 = sshll.u32 %s851_s2, 4  ;;  %s706_s6 = smov [#allocation2]   ;;  %s169_s5 = int_to_ptr.hbm [resolvable:$true] %s168_s5 }
  0x10   : > { %p530_p12 = pneg %p155_p10  ;;  %s170_s7 = sshll.u32 %s706_s6, 4  ;;  %s171_s7 = int_to_ptr.vmem [resolvable:$true] %s170_s7 }
  0x11   : > { %s707_s8 = smov 128   ;;  %s708_s9 = smov 8  }
  0x12   : > { %p531_p13 = pnand %p538_p11, %p530_p12  ;;  %199 = sbr.rel (%p155_p10) target bundleno = 314 (0x13a), region = 36 }
  0x14   : > { %533 = dma.hbm_to_vmem [thread:$0]  (!%p531_p13), %s169_s5, 6144, %s171_s7, [#allocation3], %s707_s8, %s707_s8, %s708_s9  }
  0x17   : > { %675 = dma.done.wait (%p538_p11), [#allocation3], 6144  }
  0x18   : > { %677 = vsyncadd (%p538_p11), [#allocation3], 4294961152  ;;  %p228_p0 = scmp.lt.s32.totalorder %s696_s18, 1  ;;  %vm243_vm0 = vcmask 1041408   ;;  %v275_v2 = vld [vmem:[#allocation2 + $0x78] sm:$0xff]  ;;  %vm239_vm1 = vcmask 31744  }
  0x19   : > { %v238_v3 = vld [vmem:[%s850_s1] sm:$0xf]  ;;  %v297_v4 = vld [vmem:[%s850_s1 + $0x4] sm:$0xf]  ;;  %v330_v5 = vld [vmem:[#allocation2 + $0xf8] sm:$0xff]  ;;  %276 = vmatpush.msra.mxu1 %v275_v2  ;;  %s225_s5 = sand.u32 1, %s688_s16  }
  0x1a   : > { %s229_s10 = scalar_select %p228_p0, %s696_s18, 1  ;;  %v274_v6 = vld [vmem:[#allocation2 + $0x70] sm:$0xff]  ;;  %331 = vmatpush.msra.mxu3 %v330_v5  ;;  %v273_v8 = vld [vmem:[#allocation2 + $0x68] sm:$0xff]  ;;  %v385_v10 = vld [vmem:[#allocation2 + $0x178] sm:$0xff] }
  0x1b   : > { %v329_v7 = vld [vmem:[#allocation2 + $0xf0] sm:$0xff]  ;;  %v328_v9 = vld [vmem:[#allocation2 + $0xe8] sm:$0xff]  ;;  %277 = vmatpush.msra.mxu1 %v274_v6  ;;  %v272_v11 = vld [vmem:[#allocation2 + $0x60] sm:$0xff]  ;;  %s515_s6 = sshll.u32 %s225_s5, 3  ;;  %s521_s7 = sshll.u32 %s696_s18, 3 }
  0x1c   : > { %s516_s11 = sshll.u32 %s229_s10, 1  ;;  %332 = vmatpush.msra.mxu3 %v329_v7  ;;  %v327_v12 = vld [vmem:[#allocation2 + $0xe0] sm:$0xff]  ;;  %v384_v13 = vld [vmem:[#allocation2 + $0x170] sm:$0xff]  ;;  %v383_v14 = vld [vmem:[#allocation2 + $0x168] sm:$0xff]  ;;  %s420_s12 = scalar_lea.hbm %s853_s4, %s521_s7 }
  0x1d   : > { %s234_s14 = scalar_lea.vmem %s849_s0, %s516_s11  ;;  %278 = vmatpush.msra.mxu1 %v273_v8  ;;  %v271_v15 = vld [vmem:[#allocation2 + $0x58] sm:$0xff]  ;;  %v382_v17 = vld [vmem:[#allocation2 + $0x160] sm:$0xff]  ;;  %v270_v18 = vld [vmem:[#allocation2 + $0x50] sm:$0xff]  ;;  %s227_s13 = scalar_lea.vmem [#allocation5], %s515_s6 }
  0x1e   : > { %v236_v0 = vld [vmem:[%s234_s14] sm:$0x3]  ;;  %333 = vmatpush.msra.mxu3 %v328_v9  ;;  %v326_v16 = vld [vmem:[#allocation2 + $0xd8] sm:$0xff]  ;;  %v325_v19 = vld [vmem:[#allocation2 + $0xd0] sm:$0xff]  ;;  %s422_s14 = sshll.u32 %s227_s13, 4  ;;  %s424_s21 = sshll.u32 %s420_s12, 4  ;;  %s423_s14 = int_to_ptr.vmem [resolvable:$true] %s422_s14  ;;  %s425_s21 = int_to_ptr.hbm [resolvable:$true] %s424_s21 }
  0x1f   : > { %v245_v1 = vsel %vm243_vm0, %v236_v0, 0  ;;  %279 = vmatpush.msra.mxu1 %v272_v11  ;;  %v381_v20 = vld [vmem:[#allocation2 + $0x158] sm:$0xff]  ;;  %v269_v21 = vld [vmem:[#allocation2 + $0x48] sm:$0xff]  ;;  %v380_v23 = vld [vmem:[#allocation2 + $0x150] sm:$0xff]  ;;  %s409_s18 = scalar_lea.sflag [#allocation4], %s225_s5  ;;  %s636_s22 = sshra.s32 %s425_s21, 4  ;;  %s637_s22 = int_to_ptr.hbm [resolvable:$true] %s636_s22 }
  0x20   : > { %254 = vmatpush.bf16.msra.mxu0 %v245_v1  ;;  %308 = vmatpush.bf16.msra.mxu2 %v245_v1  ;;  %v324_v22 = vld [vmem:[#allocation2 + $0xc8] sm:$0xff]  ;;  %v268_v24 = vld [vmem:[#allocation2 + $0x40] sm:$0xff]  ;;  %v267_v27 = vld [vmem:[#allocation2 + $0x38] sm:$0xff]  ;;  %s638_s24 = scalar_lea.hbm %s637_s22, 8  ;;  %s642_s30 = scalar_lea.hbm %s853_s4, 16 }
  0x21   : > { %334 = vmatpush.msra.mxu3 %v327_v12  ;;  %280 = vmatpush.msra.mxu1 %v271_v15  ;;  %v323_v25 = vld [vmem:[#allocation2 + $0xc0] sm:$0xff]  ;;  %v379_v26 = vld [vmem:[#allocation2 + $0x148] sm:$0xff]  ;;  %v322_v28 = vld [vmem:[#allocation2 + $0xb8] sm:$0xff]  ;;  %p639_p1 = scmp.ne.s32.totalorder %s637_s22, %s638_s24  ;;  %p643_p5 = scmp.lt.s32.totalorder %s637_s22, %s853_s4 }
  0x22   : > { %v352_v29 = vld [vmem:[%s850_s1 + $0x8] sm:$0xf]  ;;  %v266_v30 = vld [vmem:[#allocation2 + $0x30] sm:$0xff]  ;;  %v264_v34 = vld [vmem:[#allocation2 + $0x20] sm:$0xff]  ;;  %p644_p6 = scmp.lt.s32.totalorder %s642_s30, %s638_s24 }
  0x23   : > { %517 = vmatmul.msk.bf16.vlgmr.msra.gmra.mxu0 %vm239_vm1, %v238_v3  ;;  %518 = vmatmul.msk.bf16.vlgmr.msra.gmra.mxu2 %vm239_vm1, %v297_v4  ;;  %v321_v31 = vld [vmem:[#allocation2 + $0xb0] sm:$0xff]  ;;  %v265_v32 = vld [vmem:[#allocation2 + $0x28] sm:$0xff]  ;;  %v319_v35 = vld [vmem:[#allocation2 + $0xa0] sm:$0xff]  ;;  %p640_p2 = pnand %p639_p1, %p774_p4 }
  0x24   : > { %363 = vmatpush.bf16.msrb.mxu0 %v245_v1  ;;  %386 = vmatpush.msrb.mxu2 %v385_v10  ;;  %v320_v33 = vld [vmem:[#allocation2 + $0xa8] sm:$0xff]  ;;  %v263_v36 = vld [vmem:[#allocation2 + $0x18] sm:$0xff]  ;;  %v262_v37 = vld [vmem:[#allocation2 + $0x10] sm:$0xff]  ;;  %p645_p7 = por %p644_p6, %p643_p5 }
  0x25   : > { %335 = vmatpush.msra.mxu3 %v326_v16  ;;  %281 = vmatpush.msra.mxu1 %v270_v18  ;;  %v261_v38 = vld [vmem:[#allocation2 + $0x8] sm:$0xff]  ;;  %v260_v39 = vld [vmem:[#allocation2] sm:$0xff]  ;;  %v318_v40 = vld [vmem:[#allocation2 + $0x98] sm:$0xff]  ;;  %p641_p3 = pneg %p640_p2 }
  0x26   : > { %387 = vmatpush.msrb.mxu2 %v384_v13  ;;  %v378_v41 = vld [vmem:[#allocation2 + $0x140] sm:$0xff]  ;;  %v317_v42 = vld [vmem:[#allocation2 + $0x90] sm:$0xff]  ;;  %v377_v43 = vld [vmem:[#allocation2 + $0x138] sm:$0xff] }
  0x27   : > { %336 = vmatpush.msra.mxu3 %v325_v19  ;;  %282 = vmatpush.msra.mxu1 %v269_v21  ;;  %v316_v44 = vld [vmem:[#allocation2 + $0x88] sm:$0xff]  ;;  %v376_v45 = vld [vmem:[#allocation2 + $0x130] sm:$0xff]  ;;  %v315_v46 = vld [vmem:[#allocation2 + $0x80] sm:$0xff]  ;;  %p646_p9 = pnand %p645_p7, %p641_p3 }
  0x28   : > { %388 = vmatpush.msrb.mxu2 %v383_v14  ;;  %v375_v47 = vld [vmem:[#allocation2 + $0x128] sm:$0xff]  ;;  %v374_v48 = vld [vmem:[#allocation2 + $0x120] sm:$0xff]  ;;  %v373_v49 = vld [vmem:[#allocation2 + $0x118] sm:$0xff] }
  0x29   : > { %337 = vmatpush.msra.mxu3 %v324_v22  ;;  %283 = vmatpush.msra.mxu1 %v268_v24  ;;  %v372_v50 = vld [vmem:[#allocation2 + $0x110] sm:$0xff]  ;;  %v371_v51 = vld [vmem:[#allocation2 + $0x108] sm:$0xff]  ;;  %v370_v52 = vld [vmem:[#allocation2 + $0x100] sm:$0xff] }
  0x2a   : > { %389 = vmatpush.msrb.mxu2 %v382_v17  ;;  %v237_v59 = vld [vmem:[%s852_s3] sm:$0xff] }
  0x2b   : > { %338 = vmatpush.msra.mxu3 %v323_v25  ;;  %284 = vmatpush.msra.mxu1 %v267_v27 }
  0x2c   : > { %390 = vmatpush.msrb.mxu2 %v381_v20 }
  0x2d   : > { %339 = vmatpush.msra.mxu3 %v322_v28  ;;  %285 = vmatpush.msra.mxu1 %v266_v30 }
  0x2e   : > { %391 = vmatpush.msrb.mxu2 %v380_v23 }
  0x2f   : > { %340 = vmatpush.msra.mxu3 %v321_v31  ;;  %286 = vmatpush.msra.mxu1 %v265_v32 }
  0x30   : > { %392 = vmatpush.msrb.mxu2 %v379_v26 }
  0x31   : > { %341 = vmatpush.msra.mxu3 %v320_v33  ;;  %287 = vmatpush.msra.mxu1 %v264_v34 }
  0x32   : > { %393 = vmatpush.msrb.mxu2 %v378_v41 }
  0x33   : > { %519 = vmatmul.msk.bf16.vlgmr.msrb.gmra.mxu0 %vm239_vm1, %v352_v29  ;;  %342 = vmatpush.msra.mxu3 %v319_v35 }
  0x34   : > { %288 = vmatpush.msra.mxu1 %v263_v36  ;;  %394 = vmatpush.msrb.mxu2 %v377_v43 }
  0x35   : > { %343 = vmatpush.msra.mxu3 %v318_v40 }
  0x36   : > { %289 = vmatpush.msra.mxu1 %v262_v37  ;;  %395 = vmatpush.msrb.mxu2 %v376_v45 }
  0x37   : > { %344 = vmatpush.msra.mxu3 %v317_v42 }
  0x38   : > { %290 = vmatpush.msra.mxu1 %v261_v38  ;;  %396 = vmatpush.msrb.mxu2 %v375_v47 }
  0x39   : > { %345 = vmatpush.msra.mxu3 %v316_v44 }
  0x3a   : > { %291 = vmatpush.msra.mxu1 %v260_v39  ;;  %397 = vmatpush.msrb.mxu2 %v374_v48 }
  0x3b   : > { %346 = vmatpush.msra.mxu3 %v315_v46 }
  0x3c   : > { %398 = vmatpush.msrb.mxu2 %v373_v49 }
  0x3e   : > { %399 = vmatpush.msrb.mxu2 %v372_v50 }
  0x40   : > { %400 = vmatpush.msrb.mxu2 %v371_v51 }
  0x42   : > { %401 = vmatpush.msrb.mxu2 %v370_v52 }
  0xa0   : > { %v256_v53 = vpop.f32.mrf.mxu0 }
  0xa1   : > { %292 = vmatmul.f32.vlgmr.msra.gmra.mxu1 %v256_v53 }
  0xa6   : > { %v310_v54 = vpop.f32.mrf.mxu2 }
  0xa7   : > { %347 = vmatmul.f32.vlgmr.msra.gmra.mxu3 %v310_v54 }
  0xa8   : > { %v258_v55 = vpop.f32.mrf.mxu0 }
  0xae   : > { %v312_v56 = vpop.f32.mrf.mxu2 }
  0xb0   : > { %v365_v57 = vpop.f32.mrf.mxu0 }
  0xb1   : > { %402 = vmatmul.f32.vlgmr.msrb.gmra.mxu2 %v365_v57 }
  0xb8   : > { %v367_v58 = vpop.f32.mrf.mxu0 }
 0x11e   : > { %v293_v60 = vpop.f32.mrf.mxu1 }
 0x11f   : > { %v296_v62 = vadd.f32 %v293_v60, %v237_v59 }
 0x12a   : > { %v348_v61 = vpop.f32.mrf.mxu3 }
 0x12b   : > { %v351_v63 = vadd.f32 %v348_v61, %v296_v62 }
 0x134   : > { %v403_v0 = vpop.f32.mrf.mxu2 }
 0x135   : > { %v406_v1 = vadd.f32 %v403_v0, %v351_v63 }
 0x137   : > { %407 = vst [vmem:[%s227_s13] sm:$0xff] %v406_v1 }
 0x138   : > { %649 = shalt.err (!%p646_p9)
}
 0x139   : > { %528 = dma.vmem_to_hbm [thread:$0]  (%p774_p4), %s423_s14, 128, %s425_s21, %s409_s18  }
 0x13a PF: > { %p540_p10 = scmp.ge.s32.totalorder %s704_s20, 2  ;;  %s436_s5 = sand.u32 1, %s684_s15  }
 0x13b   : > { %s437_s8 = scalar_lea.sflag [#allocation4], %s436_s5 }
 0x13c   : > { %p535_p11 = pnand %p540_p10, %p781_p8 }
 0x13e   : > { %p536_p12 = pneg %p535_p11 }
 0x140   : > { %679 = dma.done.wait (%p536_p12), %s437_s8, 128  }
 0x141   : > { %681 = vsyncadd (%p536_p12), %s437_s8, 4294967168  ;;  %s18_s20 = sadd.s32 1, %s704_s20   ;;  %s856_s15 = smov %s688_s16 }
 0x142   : > { %p15_p13 = scmp.ge.s32.totalorder %s18_s20, 4   ;;  %s857_s16 = smov %s692_s17 }
 0x143   : > { %s858_s17 = smov %s787_s28  ;;  %s859_s18 = smov %s700_s19 }
 0x144   : > { %s860_s19 = smov %s862_s23  ;;  %17 = sbr.rel (!%p15_p13) target bundleno = 5 (0x5), region = 78 }
 0x149   :  { %443 = vsyncpa [#allocation3], 1 }
 0x14a   :  { %445 = vsyncpa [#allocation3 + $0x1], 1 }
 0x14b   :  { %446 = vsyncpa [#allocation4], 1 }
 0x14c   :  { %448 = vsyncpa [#allocation4 + $0x1], 1 }

</bundles_post_ra>
